<compile_context>
chip_gen: v7x
topology: tpu7x:2x2x1
jax: 0.10.0
libtpu: 0.0.40
codegen_flags: <defaults>
</compile_context>

<pallas_src>
import functools

import jax
import jax.numpy as jnp
from jax.experimental import pallas as pl
from jax.experimental.pallas import tpu as pltpu

LANE = 128


# ----------------------------- Pallas kernel -------------------------------
def _residual_block_kernel(x_ref, w1_ref, w2_ref, p_ref, out_ref,
                           pad1_ref, pad2_ref, *, kernel_size, dilation,
                           c_real, fuse_taps, eps):
    BT, LT, Cp = x_ref.shape
    P1 = pad1_ref.shape[1] - LT       # conv1 causal-history rows carried
    P2 = pad2_ref.shape[1] - LT       # conv2 causal-history rows carried
    M = BT * LT                       # fold batch into the matmul M dim
    sdt = pad1_ref.dtype              # staging / matmul-operand dtype

    li = pl.program_id(1)             # inner ("arbitrary") L-step index

    # Zero the causal-history rows on the first L-step of this B-tile only.
    if P1 > 0 or P2 > 0:
        @pl.when(li == 0)
        def _zero_hist():
            if P1 > 0:
                pad1_ref[:, :P1, :] = jnp.zeros((BT, P1, Cp), sdt)
            if P2 > 0:
                pad2_ref[:, :P2, :] = jnp.zeros((BT, P2, Cp), sdt)

    p = p_ref[...]                    # (8, Cp) packed per-channel vectors
    b1, g1, be1, gc1 = p[0:1], p[1:2], p[2:3], p[3:4]
    b2, g2, be2, gc2 = p[4:5], p[5:6], p[6:7], p[7:8]

    def conv(cur, pad_ref, w_ref, b_row, dil, P):
        # `cur` == pad_ref[:, P:, :], already resident in vregs (no re-load).
        if fuse_taps:
            # Lane-concat the K causal taps -> ONE fused MXU matmul (v6e/v7x).
            taps = []
            for k in range(kernel_size):
                sh = (kernel_size - 1 - k) * dil          # static causal shift
                taps.append(cur if sh == 0
                            else pad_ref[:, P - sh:P - sh + LT, :])
            xs = jnp.concatenate(taps, axis=-1).reshape(M, kernel_size * Cp)
            acc = jnp.dot(xs, w_ref[...], preferred_element_type=jnp.float32)
        else:
            # v5e: K accumulating 128-deep dots straight from the pad views.
            acc = None
            for k in range(kernel_size):
                sh = (kernel_size - 1 - k) * dil
                tap = cur if sh == 0 else pad_ref[:, P - sh:P - sh + LT, :]
                d = jnp.dot(tap.reshape(M, Cp),
                            w_ref[k * Cp:(k + 1) * Cp, :],
                            preferred_element_type=jnp.float32)
                acc = d if acc is None else acc + d
        return acc + b_row                                # b_row: (1, Cp)

    def ln_relu_gate(h, g_row, be_row, gc_row):
        # One-pass LN stats over the c_real true channels; padded lanes of h
        # are exactly zero so unmasked lane reductions are correct.
        inv_c = 1.0 / c_real
        mean = jnp.sum(h, axis=-1, keepdims=True) * inv_c
        var = jnp.sum(h * h, axis=-1, keepdims=True) * inv_c - mean * mean
        y = (h - mean) * jax.lax.rsqrt(var + eps) * g_row + be_row  # EUP rsqrt
        return jnp.maximum(y, 0.0) * gc_row                         # ReLU+gate

    x = x_ref[...].astype(jnp.float32)
    xs = x.astype(sdt)
    pad1_ref[:, P1:, :] = xs                       # stage for shifted taps
    h = ln_relu_gate(conv(xs, pad1_ref, w1_ref, b1, dilation, P1),
                     g1, be1, gc1)
    hs = h.reshape(BT, LT, Cp).astype(sdt)
    pad2_ref[:, P2:, :] = hs                       # stage conv2 operand
    h = ln_relu_gate(conv(hs, pad2_ref, w2_ref, b2, 2 * dilation, P2),
                     g2, be2, gc2)

    out_ref[...] = (h.reshape(BT, LT, Cp) + x).astype(out_ref.dtype)

    # Carry this tile's last P rows as the next L-step's causal history
    # (requires LT >= P2 >= P1, enforced wrapper-side; skipped on last step).
    if P1 > 0 or P2 > 0:
        @pl.when(li + 1 < pl.num_programs(1))
        def _carry_hist():
            if P1 > 0:
                pad1_ref[:, :P1, :] = pad1_ref[:, LT:LT + P1, :]
            if P2 > 0:
                pad2_ref[:, :P2, :] = pad2_ref[:, LT:LT + P2, :]


# ------------------------------ glue (JAX) ---------------------------------
def attn_fmask(params, s, t):
    """Task-gate masks (attn_fmask branch) for num_task == 1.

    mlp[t] is Linear(2*num_task-1 = 1, 1) applied per-channel:
      gc = sigmoid(s * (w * tanh(s * emb[t]) + b))
    """
    # TODO(synk): num_task > 1 path (concat of +/- other-task embeddings) not
    # implemented; module default num_task=1 makes those loops no-ops.
    e1 = params["ec1"][t]
    e2 = params["ec2"][t]
    a1 = jnp.tanh(s * e1) * params["mlp1_w"] + params["mlp1_b"]
    a2 = jnp.tanh(s * e2) * params["mlp2_w"] + params["mlp2_b"]
    gc1 = jax.nn.sigmoid(s * a1).reshape(1, -1)
    gc2 = jax.nn.sigmoid(s * a2).reshape(1, -1)
    return gc1, gc2


def _default_fuse_taps():
    # v5e's 128x128 MXU is already filled by a Cp=128-deep per-tap dot; the
    # fused K*Cp-deep contraction only pays off on v6e/v7x (256-deep MXU).
    try:
        kind = jax.devices()[0].device_kind.lower()
        if "v5 lite" in kind or "v5lite" in kind or "v5e" in kind:
            return False
    except Exception:
        pass
    return True


def _pick_l_tile(L, hist):
    # Largest multiple-of-8 divisor of L that covers the causal history and
    # stays <= 512 rows per step; fall back to the full sequence.
    best = None
    for d in range(8, min(L, 512) + 1, 8):
        if L % d == 0 and d >= hist:
            best = d
    return best if best is not None else L


def residual_block_forward(x, params, s, t, *, kernel_size, dilation,
                           matmul_dtype=jnp.float32, bt=None, lt=None,
                           fuse_taps=None):
    """ResidualBlock forward. Returns (out, (gc1, gc2)).

    NOTE: set matmul_dtype=jnp.bfloat16 for production-sized C — halves the
    pad scratch / operand / weight traffic; accumulation stays f32.
    """
    B, L, C = x.shape
    # Branch selection from the torch forward (t_ == current_task here), so
    # the attn_fmask masks are used; resolved statically wrapper-side.
    gc1, gc2 = attn_fmask(params, s, t)

    Cp = ((C + LANE - 1) // LANE) * LANE            # lane-dense channel pad
    K = kernel_size
    P1 = (K - 1) * dilation                         # conv1 causal history
    P2 = (K - 1) * 2 * dilation                     # conv2 causal history

    if fuse_taps is None:
        fuse_taps = _default_fuse_taps()
    if bt is None:
        bt = 1 if B > 1 else B                      # >=2 B-steps -> both v7x TCs
    if lt is None:
        lt = _pick_l_tile(L, P2)
    assert B % bt == 0 and L % lt == 0
    assert lt >= P2, "L tile must cover the conv2 causal history"
    assert lt % 8 == 0 or lt == L, "(8,128) block constraint on the L tile"

    def pad_c(a):                                    # zero-pad last dim C->Cp
        return jnp.pad(a, [(0, 0)] * (a.ndim - 1) + [(0, Cp - C)])

    def fuse_w(w):                                   # (K,C,C)->(K*Cp,Cp), cast
        wp = jnp.pad(w, ((0, 0), (0, Cp - C), (0, Cp - C)))
        return wp.reshape(K * Cp, Cp).astype(matmul_dtype)

    x_p = pad_c(x)                                   # (B, L, Cp)
    w1f = fuse_w(params["w1"])
    w2f = fuse_w(params["w2"])
    # Pack all eight (1, C) vectors into one (8, Cp) array -> single DMA.
    pvec = jnp.concatenate(
        [pad_c(params["b1"]), pad_c(params["ln1_w"]), pad_c(params["ln1_b"]),
         pad_c(gc1),
         pad_c(params["b2"]), pad_c(params["ln2_w"]), pad_c(params["ln2_b"]),
         pad_c(gc2)], axis=0).astype(jnp.float32)    # (8, Cp)

    # VMEM budget: 2x double-buffered in/out blocks + resident weight slabs +
    # staging pads + fused operand + f32 intermediates; clamp to v7x's 64 MiB.
    xb = x_p.dtype.itemsize
    mb = jnp.dtype(matmul_dtype).itemsize
    est = (4 * bt * lt * Cp * xb
           + 2 * K * Cp * Cp * mb
           + 8 * Cp * 4
           + bt * ((P1 + lt) + (P2 + lt)) * Cp * mb
           + (bt * lt * K * Cp * mb if fuse_taps else 0)
           + 6 * bt * lt * Cp * 4)
    vmem_limit = int(min(max(2 * est, 32 << 20), 64 << 20))
    # TODO(synk): sweep bt/lt per generation — v5e/v6e (128 MiB VMEM) tolerate
    # larger tiles than v7x (64 MiB); target ~512-2048 matmul rows per step.

    kernel = functools.partial(
        _residual_block_kernel, kernel_size=K, dilation=dilation,
        c_real=C, fuse_taps=fuse_taps, eps=1e-8)

    out_p = pl.pallas_call(
        kernel,
        out_shape=jax.ShapeDtypeStruct((B, L, Cp), x.dtype),
        grid_spec=pltpu.PrefetchScalarGridSpec(
            num_scalar_prefetch=0,
            grid=(B // bt, L // lt),                 # L innermost (history carry)
            in_specs=[pl.BlockSpec((bt, lt, Cp), lambda bi, li: (bi, li, 0)),
                      pl.BlockSpec((K * Cp, Cp), lambda bi, li: (0, 0)),
                      pl.BlockSpec((K * Cp, Cp), lambda bi, li: (0, 0)),
                      pl.BlockSpec((8, Cp), lambda bi, li: (0, 0))],
            out_specs=pl.BlockSpec((bt, lt, Cp), lambda bi, li: (bi, li, 0)),
            scratch_shapes=[pltpu.VMEM((bt, P1 + lt, Cp), matmul_dtype),
                            pltpu.VMEM((bt, P2 + lt, Cp), matmul_dtype)]),
        compiler_params=pltpu.CompilerParams(
            dimension_semantics=("parallel", "arbitrary"),
            vmem_limit_bytes=vmem_limit),
    )(x_p, w1f, w2f, pvec)

    return out_p[..., :C], (gc1, gc2)


# ------------------------- pure-JAX reference ------------------------------
def ref_forward(x, params, gc1, gc2, K, d, eps=1e-8):
    def conv(inp, w, b, dil):
        B, L, _ = inp.shape
        acc = jnp.zeros((B, L, w.shape[-1]), jnp.float32)
        for k in range(K):
            sh = (K - 1 - k) * dil
            xs = jnp.pad(inp, ((0, 0), (sh, 0), (0, 0)))[:, :L, :]
            acc = acc + jnp.einsum("blc,cd->bld", xs, w[k])
        return acc + b

    def ln_relu_gate(h, g, be, gc):
        mean = h.mean(-1, keepdims=True)
        var = ((h - mean) ** 2).mean(-1, keepdims=True)
        y = (h - mean) / jnp.sqrt(var + eps) * g + be
        return jnp.maximum(y, 0.0) * gc

    h = conv(x, params["w1"], params["b1"], d)
    h = ln_relu_gate(h, params["ln1_w"], params["ln1_b"], gc1)
    h = conv(h, params["w2"], params["b2"], 2 * d)
    h = ln_relu_gate(h, params["ln2_w"], params["ln2_b"], gc2)
    return h + x


# ---------------------------------- main -----------------------------------
if __name__ == "__main__":
    key = jax.random.PRNGKey(0)
    B, L, C = 2, 16, 8          # in_channel == out_channel (required by residual)
    K, DIL = 3, 1               # kernel_size=3, dilation=1
    keys = jax.random.split(key, 10)

    x = jax.random.normal(keys[0], (B, L, C), jnp.float32)

    bound = 1.0 / (C * K) ** 0.5  # deterministic, conv-style uniform init
    params = dict(
        # w[k, ci, co] corresponds to torch conv.weight[co, ci, 0, k]
        w1=jax.random.uniform(keys[1], (K, C, C), jnp.float32, -bound, bound),
        b1=jax.random.uniform(keys[2], (1, C), jnp.float32, -bound, bound),
        ln1_w=jnp.ones((1, C), jnp.float32),
        ln1_b=jnp.zeros((1, C), jnp.float32),
        w2=jax.random.uniform(keys[3], (K, C, C), jnp.float32, -bound, bound),
        b2=jax.random.uniform(keys[4], (1, C), jnp.float32, -bound, bound),
        ln2_w=jnp.ones((1, C), jnp.float32),
        ln2_b=jnp.zeros((1, C), jnp.float32),
        # Embedding(6, C), uniform in task_embs=[0, 2]
        ec1=jax.random.uniform(keys[5], (6, C), jnp.float32, 0.0, 2.0),
        ec2=jax.random.uniform(keys[6], (6, C), jnp.float32, 0.0, 2.0),
        # mlp1[0]/mlp2[0]: Linear(1, 1), weight ~ N(0, 0.01), bias = 0.1
        mlp1_w=(0.01 * jax.random.normal(keys[7], ())).astype(jnp.float32),
        mlp1_b=jnp.float32(0.1),
        mlp2_w=(0.01 * jax.random.normal(keys[8], ())).astype(jnp.float32),
        mlp2_b=jnp.float32(0.1),
    )

    s = jnp.float32(2.0)   # x_[1]: scalar scale used by the task gates
    t_ = 0                 # x_[3]: task id (== current_task -> attn_fmask branch)

    # bt=1, lt=8 -> grid (2, 2): exercises megacore-parallel B axis and the
    # carried causal history across two L-steps.
    out, (gc1, gc2) = residual_block_forward(
        x, params, s, t_, kernel_size=K, dilation=DIL, bt=1, lt=8)
    out = jax.block_until_ready(out)

    ref = ref_forward(x, params, gc1, gc2, K, DIL)
    assert jnp.allclose(out, ref, atol=1e-4, rtol=1e-4), float(
        jnp.max(jnp.abs(out - ref)))
    print("KERNEL_OK")
</pallas_src>

<mosaic_0001>
module attributes {stable_mosaic.version = 11 : i64} {
  func.func @_residual_block_kernel(%arg0: i32, %arg1: i32, %arg2: memref<1x8x128xf32, #tpu.memory_space<vmem>>, %arg3: memref<384x128xf32, #tpu.memory_space<vmem>>, %arg4: memref<384x128xf32, #tpu.memory_space<vmem>>, %arg5: memref<8x128xf32, #tpu.memory_space<vmem>>, %arg6: memref<1x8x128xf32, #tpu.memory_space<vmem>>, %arg7: memref<1x10x128xf32, #tpu.memory_space<vmem>>, %arg8: memref<1x12x128xf32, #tpu.memory_space<vmem>>) attributes {dimension_semantics = [#tpu.dimension_semantics<parallel>, #tpu.dimension_semantics<arbitrary>], iteration_bounds = array<i64: 2, 2>, scalar_prefetch = 0 : i64, scratch_operands = 2 : i64, tpu.core_type = #tpu.core_type<tc>, window_params = [{transform_indices = @transform_0, window_bounds = array<i64: 1, 8, 128>}, {pipeline_mode = #tpu.pipeline_mode<synchronous>, transform_indices = @transform_1, window_bounds = array<i64: 384, 128>}, {pipeline_mode = #tpu.pipeline_mode<synchronous>, transform_indices = @transform_2, window_bounds = array<i64: 384, 128>}, {pipeline_mode = #tpu.pipeline_mode<synchronous>, transform_indices = @transform_3, window_bounds = array<i64: 8, 128>}, {transform_indices = @transform_4, window_bounds = array<i64: 1, 8, 128>}]} {
    %c0_i32 = arith.constant 0 : i32
    %0 = arith.cmpi eq, %arg1, %c0_i32 : i32
    %1 = arith.extui %0 : i1 to i32
    %c0_i32_0 = arith.constant 0 : i32
    %2 = arith.cmpi ne, %1, %c0_i32_0 : i32
    scf.if %2 {
      %cst_41 = arith.constant 0.000000e+00 : f32
      %91 = vector.broadcast %cst_41 : f32 to vector<1x2x128xf32>
      %c0_42 = arith.constant 0 : index
      %c0_43 = arith.constant 0 : index
      %c0_44 = arith.constant 0 : index
      %92 = vector.load %arg7[%c0_42, %c0_43, %c0_44] : memref<1x10x128xf32, #tpu.memory_space<vmem>>, vector<1x2x128xf32>
      tpu.vector_store %arg7[%c0_42, %c0_43, %c0_44], %91 {strides = array<i32>} : memref<1x10x128xf32, #tpu.memory_space<vmem>>, vector<1x2x128xf32>,
      %cst_45 = arith.constant 0.000000e+00 : f32
      %93 = vector.broadcast %cst_45 : f32 to vector<1x4x128xf32>
      %c0_46 = arith.constant 0 : index
      %c0_47 = arith.constant 0 : index
      %c0_48 = arith.constant 0 : index
      %94 = vector.load %arg8[%c0_46, %c0_47, %c0_48] : memref<1x12x128xf32, #tpu.memory_space<vmem>>, vector<1x4x128xf32>
      tpu.vector_store %arg8[%c0_46, %c0_47, %c0_48], %93 {strides = array<i32>} : memref<1x12x128xf32, #tpu.memory_space<vmem>>, vector<1x4x128xf32>,
    } else {
    }
    %c0 = arith.constant 0 : index
    %c0_1 = arith.constant 0 : index
    %3 = vector.load %arg5[%c0, %c0_1] : memref<8x128xf32, #tpu.memory_space<vmem>>, vector<8x128xf32>
    %4 = vector.extract_strided_slice %3 {offsets = [0, 0], sizes = [1, 128], strides = [1, 1]} : vector<8x128xf32> to vector<1x128xf32>
    %5 = vector.extract_strided_slice %3 {offsets = [1, 0], sizes = [1, 128], strides = [1, 1]} : vector<8x128xf32> to vector<1x128xf32>
    %6 = vector.extract_strided_slice %3 {offsets = [2, 0], sizes = [1, 128], strides = [1, 1]} : vector<8x128xf32> to vector<1x128xf32>
    %7 = vector.extract_strided_slice %3 {offsets = [3, 0], sizes = [1, 128], strides = [1, 1]} : vector<8x128xf32> to vector<1x128xf32>
    %8 = vector.extract_strided_slice %3 {offsets = [4, 0], sizes = [1, 128], strides = [1, 1]} : vector<8x128xf32> to vector<1x128xf32>
    %9 = vector.extract_strided_slice %3 {offsets = [5, 0], sizes = [1, 128], strides = [1, 1]} : vector<8x128xf32> to vector<1x128xf32>
    %10 = vector.extract_strided_slice %3 {offsets = [6, 0], sizes = [1, 128], strides = [1, 1]} : vector<8x128xf32> to vector<1x128xf32>
    %11 = vector.extract_strided_slice %3 {offsets = [7, 0], sizes = [1, 128], strides = [1, 1]} : vector<8x128xf32> to vector<1x128xf32>
    %c0_2 = arith.constant 0 : index
    %c0_3 = arith.constant 0 : index
    %c0_4 = arith.constant 0 : index
    %12 = vector.load %arg2[%c0_2, %c0_3, %c0_4] : memref<1x8x128xf32, #tpu.memory_space<vmem>>, vector<1x8x128xf32>
    %c0_5 = arith.constant 0 : index
    %c2 = arith.constant 2 : index
    %c0_6 = arith.constant 0 : index
    %13 = vector.load %arg7[%c0_5, %c2, %c0_6] : memref<1x10x128xf32, #tpu.memory_space<vmem>>, vector<1x8x128xf32>
    tpu.vector_store %arg7[%c0_5, %c2, %c0_6], %12 {strides = array<i32>} : memref<1x10x128xf32, #tpu.memory_space<vmem>>, vector<1x8x128xf32>,
    %c0_7 = arith.constant 0 : index
    %c0_8 = arith.constant 0 : index
    %c0_9 = arith.constant 0 : index
    %14 = vector.load %arg7[%c0_7, %c0_8, %c0_9] : memref<1x10x128xf32, #tpu.memory_space<vmem>>, vector<1x8x128xf32>
    %c0_10 = arith.constant 0 : index
    %c1 = arith.constant 1 : index
    %c0_11 = arith.constant 0 : index
    %15 = vector.load %arg7[%c0_10, %c1, %c0_11] : memref<1x10x128xf32, #tpu.memory_space<vmem>>, vector<1x8x128xf32>
    %16 = tpu.concatenate %14, %15, %12 in 2 : vector<1x8x128xf32>, vector<1x8x128xf32>, vector<1x8x128xf32> -> vector<1x8x384xf32>
    %17 = vector.shape_cast %16 : vector<1x8x384xf32> to vector<8x384xf32>
    %c0_12 = arith.constant 0 : index
    %c0_13 = arith.constant 0 : index
    %18 = vector.load %arg3[%c0_12, %c0_13] : memref<384x128xf32, #tpu.memory_space<vmem>>, vector<384x128xf32>
    %cst = arith.constant dense<0.000000e+00> : vector<8x128xf32>
    %19 = tpu.matmul %17, %18, %cst {dimension_numbers = #tpu.dot_dimension_numbers<[1], [0], [0], [1], [0, 0, 1, 1], [], []>} : vector<8x384xf32>, vector<384x128xf32>, vector<8x128xf32> -> vector<8x128xf32>
    %20 = vector.broadcast %4 : vector<1x128xf32> to vector<8x128xf32>
    %21 = arith.addf %19, %20 : vector<8x128xf32>
    %cst_14 = arith.constant dense<0.000000e+00> : vector<8xf32>
    %22 = vector.multi_reduction <add>, %21, %cst_14 [1] : vector<8x128xf32> to vector<8xf32>
    %23 = vector.shape_cast %22 : vector<8xf32> to vector<8x1xf32>
    %cst_15 = arith.constant 1.250000e-01 : f32
    %24 = vector.broadcast %cst_15 : f32 to vector<8x1xf32>
    %25 = arith.mulf %23, %24 : vector<8x1xf32>
    %26 = arith.mulf %21, %21 : vector<8x128xf32>
    %cst_16 = arith.constant dense<0.000000e+00> : vector<8xf32>
    %27 = vector.multi_reduction <add>, %26, %cst_16 [1] : vector<8x128xf32> to vector<8xf32>
    %28 = vector.shape_cast %27 : vector<8xf32> to vector<8x1xf32>
    %cst_17 = arith.constant 1.250000e-01 : f32
    %29 = vector.broadcast %cst_17 : f32 to vector<8x1xf32>
    %30 = arith.mulf %28, %29 : vector<8x1xf32>
    %31 = arith.mulf %25, %25 : vector<8x1xf32>
    %32 = arith.subf %30, %31 : vector<8x1xf32>
    %33 = vector.broadcast %25 : vector<8x1xf32> to vector<8x128xf32>
    %34 = arith.subf %21, %33 : vector<8x128xf32>
    %cst_18 = arith.constant 9.99999993E-9 : f32
    %35 = vector.broadcast %cst_18 : f32 to vector<8x1xf32>
    %36 = arith.addf %32, %35 : vector<8x1xf32>
    %37 = math.rsqrt %36 : vector<8x1xf32>
    %38 = vector.broadcast %37 : vector<8x1xf32> to vector<8x128xf32>
    %39 = arith.mulf %34, %38 : vector<8x128xf32>
    %40 = vector.broadcast %5 : vector<1x128xf32> to vector<8x128xf32>
    %41 = arith.mulf %39, %40 : vector<8x128xf32>
    %42 = vector.broadcast %6 : vector<1x128xf32> to vector<8x128xf32>
    %43 = arith.addf %41, %42 : vector<8x128xf32>
    %cst_19 = arith.constant 0.000000e+00 : f32
    %44 = vector.broadcast %cst_19 : f32 to vector<8x128xf32>
    %45 = arith.maximumf %43, %44 : vector<8x128xf32>
    %46 = vector.broadcast %7 : vector<1x128xf32> to vector<8x128xf32>
    %47 = arith.mulf %45, %46 : vector<8x128xf32>
    %48 = vector.shape_cast %47 : vector<8x128xf32> to vector<1x8x128xf32>
    %c0_20 = arith.constant 0 : index
    %c4 = arith.constant 4 : index
    %c0_21 = arith.constant 0 : index
    %49 = vector.load %arg8[%c0_20, %c4, %c0_21] : memref<1x12x128xf32, #tpu.memory_space<vmem>>, vector<1x8x128xf32>
    tpu.vector_store %arg8[%c0_20, %c4, %c0_21], %48 {strides = array<i32>} : memref<1x12x128xf32, #tpu.memory_space<vmem>>, vector<1x8x128xf32>,
    %c0_22 = arith.constant 0 : index
    %c0_23 = arith.constant 0 : index
    %c0_24 = arith.constant 0 : index
    %50 = vector.load %arg8[%c0_22, %c0_23, %c0_24] : memref<1x12x128xf32, #tpu.memory_space<vmem>>, vector<1x8x128xf32>
    %c0_25 = arith.constant 0 : index
    %c2_26 = arith.constant 2 : index
    %c0_27 = arith.constant 0 : index
    %51 = vector.load %arg8[%c0_25, %c2_26, %c0_27] : memref<1x12x128xf32, #tpu.memory_space<vmem>>, vector<1x8x128xf32>
    %52 = tpu.concatenate %50, %51, %48 in 2 : vector<1x8x128xf32>, vector<1x8x128xf32>, vector<1x8x128xf32> -> vector<1x8x384xf32>
    %53 = vector.shape_cast %52 : vector<1x8x384xf32> to vector<8x384xf32>
    %c0_28 = arith.constant 0 : index
    %c0_29 = arith.constant 0 : index
    %54 = vector.load %arg4[%c0_28, %c0_29] : memref<384x128xf32, #tpu.memory_space<vmem>>, vector<384x128xf32>
    %cst_30 = arith.constant dense<0.000000e+00> : vector<8x128xf32>
    %55 = tpu.matmul %53, %54, %cst_30 {dimension_numbers = #tpu.dot_dimension_numbers<[1], [0], [0], [1], [0, 0, 1, 1], [], []>} : vector<8x384xf32>, vector<384x128xf32>, vector<8x128xf32> -> vector<8x128xf32>
    %56 = vector.broadcast %8 : vector<1x128xf32> to vector<8x128xf32>
    %57 = arith.addf %55, %56 : vector<8x128xf32>
    %cst_31 = arith.constant dense<0.000000e+00> : vector<8xf32>
    %58 = vector.multi_reduction <add>, %57, %cst_31 [1] : vector<8x128xf32> to vector<8xf32>
    %59 = vector.shape_cast %58 : vector<8xf32> to vector<8x1xf32>
    %cst_32 = arith.constant 1.250000e-01 : f32
    %60 = vector.broadcast %cst_32 : f32 to vector<8x1xf32>
    %61 = arith.mulf %59, %60 : vector<8x1xf32>
    %62 = arith.mulf %57, %57 : vector<8x128xf32>
    %cst_33 = arith.constant dense<0.000000e+00> : vector<8xf32>
    %63 = vector.multi_reduction <add>, %62, %cst_33 [1] : vector<8x128xf32> to vector<8xf32>
    %64 = vector.shape_cast %63 : vector<8xf32> to vector<8x1xf32>
    %cst_34 = arith.constant 1.250000e-01 : f32
    %65 = vector.broadcast %cst_34 : f32 to vector<8x1xf32>
    %66 = arith.mulf %64, %65 : vector<8x1xf32>
    %67 = arith.mulf %61, %61 : vector<8x1xf32>
    %68 = arith.subf %66, %67 : vector<8x1xf32>
    %69 = vector.broadcast %61 : vector<8x1xf32> to vector<8x128xf32>
    %70 = arith.subf %57, %69 : vector<8x128xf32>
    %cst_35 = arith.constant 9.99999993E-9 : f32
    %71 = vector.broadcast %cst_35 : f32 to vector<8x1xf32>
    %72 = arith.addf %68, %71 : vector<8x1xf32>
    %73 = math.rsqrt %72 : vector<8x1xf32>
    %74 = vector.broadcast %73 : vector<8x1xf32> to vector<8x128xf32>
    %75 = arith.mulf %70, %74 : vector<8x128xf32>
    %76 = vector.broadcast %9 : vector<1x128xf32> to vector<8x128xf32>
    %77 = arith.mulf %75, %76 : vector<8x128xf32>
    %78 = vector.broadcast %10 : vector<1x128xf32> to vector<8x128xf32>
    %79 = arith.addf %77, %78 : vector<8x128xf32>
    %cst_36 = arith.constant 0.000000e+00 : f32
    %80 = vector.broadcast %cst_36 : f32 to vector<8x128xf32>
    %81 = arith.maximumf %79, %80 : vector<8x128xf32>
    %82 = vector.broadcast %11 : vector<1x128xf32> to vector<8x128xf32>
    %83 = arith.mulf %81, %82 : vector<8x128xf32>
    %84 = vector.shape_cast %83 : vector<8x128xf32> to vector<1x8x128xf32>
    %85 = arith.addf %84, %12 : vector<1x8x128xf32>
    %c0_37 = arith.constant 0 : index
    %c0_38 = arith.constant 0 : index
    %c0_39 = arith.constant 0 : index
    %86 = vector.load %arg6[%c0_37, %c0_38, %c0_39] : memref<1x8x128xf32, #tpu.memory_space<vmem>>, vector<1x8x128xf32>
    tpu.vector_store %arg6[%c0_37, %c0_38, %c0_39], %85 {strides = array<i32>} : memref<1x8x128xf32, #tpu.memory_space<vmem>>, vector<1x8x128xf32>,
    %c1_i32 = arith.constant 1 : i32
    %87 = arith.addi %arg1, %c1_i32 : i32
    %c2_i32 = arith.constant 2 : i32
    %88 = arith.cmpi slt, %87, %c2_i32 : i32
    %89 = arith.extui %88 : i1 to i32
    %c0_i32_40 = arith.constant 0 : i32
    %90 = arith.cmpi ne, %89, %c0_i32_40 : i32
    scf.if %90 {
      %c0_41 = arith.constant 0 : index
      %c8 = arith.constant 8 : index
      %c0_42 = arith.constant 0 : index
      %91 = vector.load %arg7[%c0_41, %c8, %c0_42] : memref<1x10x128xf32, #tpu.memory_space<vmem>>, vector<1x2x128xf32>
      %c0_43 = arith.constant 0 : index
      %c0_44 = arith.constant 0 : index
      %c0_45 = arith.constant 0 : index
      %92 = vector.load %arg7[%c0_43, %c0_44, %c0_45] : memref<1x10x128xf32, #tpu.memory_space<vmem>>, vector<1x2x128xf32>
      tpu.vector_store %arg7[%c0_43, %c0_44, %c0_45], %91 {strides = array<i32>} : memref<1x10x128xf32, #tpu.memory_space<vmem>>, vector<1x2x128xf32>,
      %c0_46 = arith.constant 0 : index
      %c8_47 = arith.constant 8 : index
      %c0_48 = arith.constant 0 : index
      %93 = vector.load %arg8[%c0_46, %c8_47, %c0_48] : memref<1x12x128xf32, #tpu.memory_space<vmem>>, vector<1x4x128xf32>
      %c0_49 = arith.constant 0 : index
      %c0_50 = arith.constant 0 : index
      %c0_51 = arith.constant 0 : index
      %94 = vector.load %arg8[%c0_49, %c0_50, %c0_51] : memref<1x12x128xf32, #tpu.memory_space<vmem>>, vector<1x4x128xf32>
      tpu.vector_store %arg8[%c0_49, %c0_50, %c0_51], %93 {strides = array<i32>} : memref<1x12x128xf32, #tpu.memory_space<vmem>>, vector<1x4x128xf32>,
    } else {
    }
    return
  }
  func.func @transform_0(%arg0: i32, %arg1: i32) -> (i32, i32, i32) {
    %c0_i32 = arith.constant 0 : i32
    %c0_i32_0 = arith.constant 0 : i32
    return %arg0, %arg1, %c0_i32 : i32, i32, i32
  }
  func.func @transform_1(%arg0: i32, %arg1: i32) -> (i32, i32) {
    %c0_i32 = arith.constant 0 : i32
    %c0_i32_0 = arith.constant 0 : i32
    %c0_i32_1 = arith.constant 0 : i32
    return %c0_i32, %c0_i32_0 : i32, i32
  }
  func.func @transform_2(%arg0: i32, %arg1: i32) -> (i32, i32) {
    %c0_i32 = arith.constant 0 : i32
    %c0_i32_0 = arith.constant 0 : i32
    %c0_i32_1 = arith.constant 0 : i32
    return %c0_i32, %c0_i32_0 : i32, i32
  }
  func.func @transform_3(%arg0: i32, %arg1: i32) -> (i32, i32) {
    %c0_i32 = arith.constant 0 : i32
    %c0_i32_0 = arith.constant 0 : i32
    %c0_i32_1 = arith.constant 0 : i32
    return %c0_i32, %c0_i32_0 : i32, i32
  }
  func.func @transform_4(%arg0: i32, %arg1: i32) -> (i32, i32, i32) {
    %c0_i32 = arith.constant 0 : i32
    %c0_i32_0 = arith.constant 0 : i32
    return %arg0, %arg1, %c0_i32 : i32, i32, i32
  }
}

</mosaic_0001>

<bundles_post_ra>
// kernel: tpu_custom_call.1
= control target key start
LH: loop header
LB: loop body
LE: loop exit
PB: predicated region body
PF: predicated region fallthrough
CT: control target
= control target key end

     0   :  { %s1813_s0 = inlined_call_operand.hbm [shape: f32[2,16,128], index: 0, kind: input, shape index: {}]   ;;  %s1814_s1 = inlined_call_operand.hbm [shape: f32[384,128], index: 1, kind: input, shape index: {}]   ;;  %s1815_s2 = inlined_call_operand.hbm [shape: f32[384,128], index: 2, kind: input, shape index: {}]   ;;  %s1816_s3 = inlined_call_operand.vmem [shape: f32[8,128], index: 3, kind: input, shape index: {}]   ;;  %s1817_s4 = inlined_call_operand.hbm [shape: f32[2,16,128], index: 4, kind: output, shape index: {}]  }
   0x1   :  { %1826 = sst [smem:[#allocation17_spill]] %s1814_s1 }
   0x2   :  { %1827 = sst [smem:[#allocation18_spill]] %s1815_s2 }
   0x3   :  { %9 = vsyncpa [#allocation5], 0 }
   0x4   :  { %11 = vsyncpa [#allocation5 + $0x1], 0 }
   0x5   :  { %12 = vsyncpa [#allocation8], 0 }
   0x6   :  { %13 = vsyncpa [#allocation6], 0 }
   0x7   :  { %15 = vsyncpa [#allocation6 + $0x1], 0  ;;  %s1488_s15 = smov 0   ;;  %s1490_s16 = smov 0  }
   0x8   :  { %s1492_s17 = smov 0   ;;  %s1494_s18 = smov 0  }
   0x9   :  { %s1496_s19 = smov 0   ;;  %s1498_s20 = smov 0  }
   0xa   :  { %s1500_s21 = smov 0   ;;  %s1502_s22 = smov 0  }
   0xb LB: > { %1828 = sst [smem:[#allocation14_spill]] %s1423_s15  ;;  %s1822_s23 = sadd.s32 4294967295, %s1451_s22   ;;  %s1451_s22 = sphi %s1502_s22, %s21_s22   ;;  %s1447_s21 = sphi %s1500_s21, %s1855_s21   ;;  %s1443_s20 = sphi %s1498_s20, %s1854_s20   ;;  %s1439_s19 = sphi %s1496_s19, %s1853_s19   ;;  %s1435_s18 = sphi %s1494_s18, %s1852_s18   ;;  %s1431_s17 = sphi %s1492_s17, %s1851_s17   ;;  %s1427_s16 = sphi %s1490_s16, %s1850_s16   ;;  %s1423_s15 = sphi %s1488_s15, %s1849_s15  }
   0xc   : > { %s848_s24 = sadd.s32 4294967294, %s1451_s22   ;;  %p55_p0 = scmp.ne.s32.totalorder %s1427_s16, %s1423_s15 }
   0xd   : > { %p1534_p1 = scmp.eq.s32.totalorder %s1822_s23, 0  ;;  %p150_p2 = scmp.eq.s32.totalorder %s848_s24, 3 }
   0xe   : > { %p849_p4 = scmp.ge.s32.totalorder %s1451_s22, 1  ;;  %p157_p6 = scmp.lt.s32.totalorder %s1451_s22, 5 }
   0xf   : > { %s1829_s25 = scalar_select %p1534_p1, 1, 0 }
  0x10   : > { %p1540_p3 = por %p1534_p1, %p55_p0  ;;  %p1545_p5 = por %p150_p2, %p55_p0 }
  0x11   : > { %p1550_p7 = pnand %p849_p4, %p157_p6  ;;  %s1453_s29 = smov [#allocation7]  }
  0x12   : > { %s1830_s26 = scalar_select %p1540_p3, 1, 0 }
  0x13   : > { %s1831_s27 = scalar_select %p1545_p5, 1, 0 }
  0x14   : > { %s1833_s28 = scalar_select %p1550_p7, 1, 0 }
  0x15   : > { %1832 = sst [smem:[#allocation15_spill]] %s1831_s27  ;;  %s169_s30 = sshll.u32 %s1453_s29, 4  ;;  %s170_s30 = int_to_ptr.vmem [resolvable:$true] %s169_s30 }
  0x16   : > { %p1166_p8 = pneg %p1550_p7  ;;  %s1454_s6 = smov [#allocation9]  }
  0x17   : > { %s182_s7 = sshll.u32 %s1454_s6, 4  ;;  %s1835_s1 = sld [smem:[#allocation17_spill]]  ;;  %s1562_s7 = int_to_ptr.vmem [resolvable:$true] %s182_s7 }
  0x18   : > { %p1558_p9 = pnand %p1166_p8, %p1534_p1 }
  0x1a   : > { %p1265_p11 = pneg %p1558_p9 }
  0x1d   : > { %s1263_s10 = scalar_lea.hbm %s1835_s1, 6144 }
  0x1e   : > { %p1264_p10 = scmp.ne.s32.totalorder %s1835_s1, %s1263_s10  ;;  %p1270_p0 = scmp.lt.u32.totalorder %s1263_s10, %s1835_s1 }
  0x20   : > { %p1266_p12 = pnand %p1265_p11, %p1264_p10 }
  0x22   : > { %p1267_p13 = pneg %p1266_p12 }
  0x24   : > { %p1272_p2 = pnand %p1270_p0, %p1267_p13 }
  0x26   : > { %1275 = shalt.err (!%p1272_p2)
}
  0x27   : > { %s1276_s24 = scalar_lea.vmem %s170_s30, 6144  ;;  %p1284_p5 = scmp.lt.s32.totalorder %s170_s30, %s170_s30 }
  0x28   : > { %p1277_p4 = scmp.ne.s32.totalorder %s170_s30, %s1276_s24  ;;  %p1285_p1 = scmp.lt.s32.totalorder %s1276_s24, %s1276_s24 }
  0x2a   : > { %p1279_p6 = pnand %p1277_p4, %p1265_p11  ;;  %p1286_p3 = por %p1285_p1, %p1284_p5 }
  0x2c   : > { %p1280_p8 = pneg %p1279_p6 }
  0x2e   : > { %p1287_p7 = pnand %p1286_p3, %p1280_p8 }
  0x30   : > { %1290 = shalt.err (!%p1287_p7)
}
  0x31   : > { %s1455_s29 = smov 128   ;;  %s1456_s6 = smov 8  }
  0x32   : > { %1169 = dma.hbm_to_vmem [thread:$0]  (!%p1558_p9), %s1835_s1, 6144, %s170_s30, [#allocation8], %s1455_s29, %s1455_s29, %s1456_s6  }
  0x33   : > { %s1836_s2 = sld [smem:[#allocation18_spill]] }
  0x39   : > { %s1291_s12 = scalar_lea.hbm %s1836_s2, 6144 }
  0x3a   : > { %p1292_p10 = scmp.ne.s32.totalorder %s1836_s2, %s1291_s12  ;;  %p1298_p5 = scmp.lt.u32.totalorder %s1291_s12, %s1836_s2 }
  0x3c   : > { %p1294_p1 = pnand %p1292_p10, %p1265_p11 }
  0x3e   : > { %p1295_p3 = pneg %p1294_p1 }
  0x40   : > { %p1300_p7 = pnand %p1298_p5, %p1295_p3 }
  0x42   : > { %1303 = shalt.err (!%p1300_p7)
}
  0x43   : > { %s1304_s30 = scalar_lea.vmem %s1562_s7, 6144  ;;  %p1312_p2 = scmp.lt.s32.totalorder %s1562_s7, %s1562_s7 }
  0x44   : > { %p1305_p12 = scmp.ne.s32.totalorder %s1562_s7, %s1304_s30  ;;  %p1313_p4 = scmp.lt.s32.totalorder %s1304_s30, %s1304_s30 }
  0x46   : > { %p1307_p13 = pnand %p1305_p12, %p1265_p11  ;;  %p1314_p6 = por %p1313_p4, %p1312_p2 }
  0x48   : > { %p1308_p0 = pneg %p1307_p13 }
  0x4a   : > { %p1315_p8 = pnand %p1314_p6, %p1308_p0 }
  0x4c   : > { %1318 = shalt.err (!%p1315_p8)
}
  0x4d   : > { %1172 = dma.hbm_to_vmem [thread:$0]  (!%p1558_p9), %s1836_s2, 6144, %s1562_s7, [#allocation8], %s1455_s29, %s1455_s29, %s1456_s6  }
  0x4e   : > { %s1837_s9 = sadd.s32 4294967295, %s1451_s22   ;;  %s30_s10 = sadd.s32 1, %s1443_s20 }
  0x4f   : > { %p144_p11 = scmp.eq.s32.totalorder %s1837_s9, 3  ;;  %p31_p10 = scmp.ge.s32.totalorder %s30_s10, 2 }
  0x50   : > { %s33_s5 = sadd.s32 1, %s1447_s21  ;;  %p49_p1 = scmp.ne.s32.totalorder %s1431_s17, %s1427_s16 }
  0x51   : > { %p50_p3 = scmp.eq.s32.totalorder %s1451_s22, 0  ;;  %s1857_s10 = smov (%p31_p10, %s30_s10), 0 }
  0x52   : > { %1838 = sst [smem:[#allocation16_spill]] %s1857_s10  ;;  %s1859_s5 = smov (!%p31_p10, %s33_s5), %s1447_s21 }
  0x53   : > { %s38_s11 = ssub.s32 %s1443_s20, %s1857_s10  ;;  %s42_s12 = sadd.s32 1, %s1431_s17 }
  0x54   : > { %p35_p5 = scmp.ge.s32.totalorder %s1859_s5, 2  ;;  %p1624_p9 = por %p144_p11, %p49_p1 }
  0x55   : > { %p1628_p7 = por %p50_p3, %p49_p1  ;;  %s199_s6 = sand.u32 1, %s1431_s17  }
  0x56   : > { %s1861_s5 = smov (%p35_p5, %s1859_s5), 0  ;;  %p1183_p12 = scmp.lt.s32.totalorder %s1451_s22, 4 }
  0x57   : > { %s853_s13 = sshll.u32 %s199_s6, 3  ;;  %s37_s14 = ssub.s32 %s1447_s21, %s1861_s5 }
  0x58   : > { %s39_s24 = sor.u32 %s38_s11, %s37_s14  ;;  %s854_s30 = sshll.u32 %s1447_s21, 1 }
  0x59   : > { %p40_p13 = scmp.eq.s32.totalorder %s39_s24, 0  ;;  %s208_s23 = sadd.s32 %s1443_s20, %s854_s30 }
  0x5a   : > { %s855_s8 = sshll.u32 %s208_s23, 7  ;;  %s203_s9 = scalar_lea.vmem [#allocation4], %s853_s13 }
  0x5b   : > { %s212_s1 = sshll.u32 %s203_s9, 4  ;;  %s1646_s15 = scalar_lea.hbm %s1813_s0, %s855_s8  ;;  %s1648_s1 = int_to_ptr.vmem [resolvable:$true] %s212_s1 }
  0x5c   : > { %s1641_s2 = scalar_select %p40_p13, %s1431_s17, %s42_s12  }
  0x5d   : > { %p1654_p0 = pnand %p1183_p12, %p1628_p7  ;;  %s200_s12 = scalar_lea.sflag [#allocation5], %s199_s6 }
  0x5e   : > { %s1319_s13 = scalar_lea.hbm %s1646_s15, 128  ;;  %s1324_s29 = scalar_lea.hbm %s1813_s0, 512 }
  0x5f   : > { %p1320_p2 = scmp.ne.s32.totalorder %s1646_s15, %s1319_s13  ;;  %p1321_p4 = pneg %p1654_p0 }
  0x60   : > { %p1325_p11 = scmp.lt.u32.totalorder %s1646_s15, %s1813_s0  ;;  %p1326_p10 = scmp.lt.u32.totalorder %s1324_s29, %s1319_s13 }
  0x61   : > { %p1322_p6 = pnand %p1321_p4, %p1320_p2  ;;  %p1328_p3 = scmp.lt.u32.totalorder %s1319_s13, %s1646_s15 }
  0x62   : > { %p1327_p1 = por %p1326_p10, %p1325_p11 }
  0x63   : > { %p1323_p8 = pneg %p1322_p6 }
  0x64   : > { %p1329_p5 = por %p1328_p3, %p1327_p1 }
  0x66   : > { %p1330_p7 = pnand %p1329_p5, %p1323_p8 }
  0x68   : > { %1333 = shalt.err (!%p1330_p7)
}
  0x69   : > { %s1334_s6 = scalar_lea.vmem %s1648_s1, 128  ;;  %s1457_s30 = smov [#allocation4]  }
  0x6a   : > { %p1335_p12 = scmp.ne.s32.totalorder %s1648_s1, %s1334_s6  ;;  %s1339_s23 = sshll.u32 %s1457_s30, 4  ;;  %s1340_s23 = int_to_ptr.vmem [resolvable:$false] %s1339_s23 }
  0x6b   : > { %s1341_s8 = scalar_lea.vmem %s1340_s23, 256  ;;  %p1342_p6 = scmp.lt.s32.totalorder %s1648_s1, %s1340_s23 }
  0x6c   : > { %p1337_p13 = pnand %p1335_p12, %p1321_p4  ;;  %p1343_p11 = scmp.lt.s32.totalorder %s1341_s8, %s1334_s6 }
  0x6e   : > { %p1338_p2 = pneg %p1337_p13  ;;  %p1344_p10 = por %p1343_p11, %p1342_p6 }
  0x70   : > { %p1345_p1 = pnand %p1344_p10, %p1338_p2 }
  0x72   : > { %1348 = shalt.err (!%p1345_p1)
}
  0x73   : > { %1176 = dma.hbm_to_vmem [thread:$0]  (!%p1654_p0), %s1646_s15, 128, %s1648_s1, %s200_s12  }
  0x74   : > { %p1842_p8 = scmp.ne.s32.totalorder %s1833_s28, 0 }
  0x75   : > { %s1686_s9 = sand.u32 (!%p1842_p8), 1, %s1427_s16   ;;  %p1843_p4 = scmp.ne.s32.totalorder (!%p1842_p8), %s1830_s26, 0 }
  0x76   : > { %221 = sbr.rel (%p1842_p8) target bundleno = 995 (0x3e3), region = 36  ;;  %s857_s13 = sshll.u32 (!%p1842_p8), %s1686_s9, 3 }
  0x77   : > { %s224_s27 = scalar_lea.sflag (!%p1842_p8), [#allocation5], %s1686_s9  ;;  %s1690_s10 = scalar_lea.vmem (!%p1842_p8), [#allocation4], %s857_s13 }
  0x7d   : > { %1410 = dma.done.wait (%p1843_p4), %s224_s27, 128  }
  0x7e   : > { %1412 = vsyncadd (%p1843_p4), %s224_s27, 4294967168  ;;  %p1844_p0 = scmp.ne.s32.totalorder %s1829_s25, 0 }
  0x80   : > { %1414 = dma.done.wait (%p1844_p0), [#allocation8], 12288  }
  0x81   : > { %1416 = vsyncadd (%p1844_p0), [#allocation8], 4294955008  ;;  %s1700_s1 = scalar_lea.vmem [#allocation10], %s857_s13  ;;  %p861_p3 = scmp.ne.s32.totalorder %s1435_s18, 0 }
  0x82   : > { %v1458_v0 = vmov (!%p861_p3), 0.0  }
  0x83   : > { %263 = sbr.rel (%p861_p3) target bundleno = 138 (0x8a), region = 52  ;;  %264 = vst [vmem:[#allocation2] sm:$0x3] (!%p861_p3), %v1458_v0  ;;  %265 = vst [vmem:[#allocation3] sm:$0xf] (!%p861_p3), %v1458_v0 }
  0x8a PF: > { %v287_v1 = vld [vmem:[#allocation7 + $0x80] sm:$0xff]  ;;  %v288_v2 = vld [vmem:[#allocation7 + $0x88] sm:$0xff]  ;;  %v289_v6 = vld [vmem:[#allocation7 + $0x90] sm:$0xff]  ;;  %v1459_v8 = vmov 0.0|0.0   ;;  %vm1460_vm0 = vmmov 0   ;;  %v1461_v9 = vmov 0.0  }
  0x8b   : > { %v271_v3 = vld [vmem:[#allocation7] sm:$0xff]  ;;  %v1042_v4 = vpack.c.bf16 %v288_v2, %v287_v1  ;;  %v272_v5 = vld [vmem:[#allocation7 + $0x8] sm:$0xff]  ;;  %v290_v7 = vld [vmem:[#allocation7 + $0x98] sm:$0xff]  ;;  %1074 = vmatprep.subr.bf16.mxu1 %v1459_v8  ;;  %1004 = vmatprep.mubr.msk.f32.mxu1 %vm1460_vm0, %v1461_v9  ;;  %s718_s26 = sadd.s32 1, %s1435_s18 }
  0x8c   : > { %v1044_v10 = vpack.c.bf16 %v272_v5, %v271_v3  ;;  %v1046_v11 = vpack.c.bf16 %v290_v7, %v289_v6  ;;  %v273_v12 = vld [vmem:[#allocation7 + $0x10] sm:$0xff]  ;;  %v274_v13 = vld [vmem:[#allocation7 + $0x18] sm:$0xff]  ;;  %v303_v14 = vld [vmem:[#allocation7 + $0x100] sm:$0xff]  ;;  %p862_p5 = scmp.ge.s32.totalorder %s718_s26, 2 }
  0x8d   : > { %1043 = vmatprep.subr.bf16.mxu0 %v1042_v4  ;;  %v304_v15 = vld [vmem:[#allocation7 + $0x108] sm:$0xff]  ;;  %v291_v16 = vld [vmem:[#allocation7 + $0xa0] sm:$0xff]  ;;  %v1048_v18 = vpack.c.bf16 %v274_v13, %v273_v12  ;;  %v305_v20 = vld [vmem:[#allocation7 + $0x110] sm:$0xff] }
  0x8e   : > { %v292_v17 = vld [vmem:[#allocation7 + $0xa8] sm:$0xff]  ;;  %1045 = vmatpush3.bf16.msra.mxu0 %v1044_v10  ;;  %v1075_v19 = vpack.c.bf16 %v304_v15, %v303_v14  ;;  %v275_v22 = vld [vmem:[#allocation7 + $0x20] sm:$0xff]  ;;  %v306_v24 = vld [vmem:[#allocation7 + $0x118] sm:$0xff] }
  0x8f   : > { %1047 = vmatprep.subr.bf16.mxu0 %v1046_v11  ;;  %v1050_v21 = vpack.c.bf16 %v292_v17, %v291_v16  ;;  %v276_v23 = vld [vmem:[#allocation7 + $0x28] sm:$0xff]  ;;  %v1078_v25 = vpack.c.bf16 %v306_v24, %v305_v20  ;;  %v293_v26 = vld [vmem:[#allocation7 + $0xb0] sm:$0xff]  ;;  %v294_v27 = vld [vmem:[#allocation7 + $0xb8] sm:$0xff]  ;;  %v319_v16 = vlaneseq }
  0x90   : > { %1076 = vmatpush3.bf16.msra.mxu1 %v1075_v19  ;;  %v307_v28 = vld [vmem:[#allocation7 + $0x120] sm:$0xff]  ;;  %v308_v29 = vld [vmem:[#allocation7 + $0x128] sm:$0xff]  ;;  %v1052_v30 = vpack.c.bf16 %v276_v23, %v275_v22  ;;  %v1054_v31 = vpack.c.bf16 %v294_v27, %v293_v26  ;;  %v277_v32 = vld [vmem:[#allocation7 + $0x30] sm:$0xff] }
  0x91   : > { %1077 = vmatprep.subr.bf16.mxu1 %v1459_v8  ;;  %v278_v33 = vld [vmem:[#allocation7 + $0x38] sm:$0xff]  ;;  %v1081_v34 = vpack.c.bf16 %v308_v29, %v307_v28  ;;  %v295_v35 = vld [vmem:[#allocation7 + $0xc0] sm:$0xff]  ;;  %v296_v36 = vld [vmem:[#allocation7 + $0xc8] sm:$0xff]  ;;  %v1721_v17 = vshrl.u32 %v319_v16, 7 }
  0x92   : > { %1049 = vmatpush3.bf16.msra.mxu0 %v1048_v18  ;;  %v309_v37 = vld [vmem:[#allocation7 + $0x130] sm:$0xff]  ;;  %v310_v38 = vld [vmem:[#allocation7 + $0x138] sm:$0xff]  ;;  %v1056_v39 = vpack.c.bf16 %v278_v33, %v277_v32  ;;  %v1058_v40 = vpack.c.bf16 %v296_v36, %v295_v35  ;;  %v279_v41 = vld [vmem:[#allocation7 + $0x40] sm:$0xff] }
  0x93   : > { %1051 = vmatprep.subr.bf16.mxu0 %v1050_v21  ;;  %v280_v42 = vld [vmem:[#allocation7 + $0x48] sm:$0xff]  ;;  %v1084_v43 = vpack.c.bf16 %v310_v38, %v309_v37  ;;  %v297_v44 = vld [vmem:[#allocation7 + $0xd0] sm:$0xff]  ;;  %v298_v45 = vld [vmem:[#allocation7 + $0xd8] sm:$0xff]  ;;  %v321_v18 = vsub.s32 0, %v1721_v17 }
  0x94   : > { %1079 = vmatpush3.bf16.msra.mxu1 %v1078_v25  ;;  %v311_v46 = vld [vmem:[#allocation7 + $0x140] sm:$0xff]  ;;  %v312_v47 = vld [vmem:[#allocation7 + $0x148] sm:$0xff]  ;;  %v1710_v48 = vld [vmem:[%s1690_s10] sm:$0xff]  ;;  %v1060_v49 = vpack.c.bf16 %v280_v42, %v279_v41  ;;  %v1062_v50 = vpack.c.bf16 %v298_v45, %v297_v44 }
  0x95   : > { %1080 = vmatprep.subr.bf16.mxu1 %v1459_v8  ;;  %268 = vst [vmem:[#allocation2 + $0x2] sm:$0xff] %v1710_v48  ;;  %v281_v51 = vld [vmem:[#allocation7 + $0x50] sm:$0xff]  ;;  %v282_v52 = vld [vmem:[#allocation7 + $0x58] sm:$0xff]  ;;  %v1087_v53 = vpack.c.bf16 %v312_v47, %v311_v46  ;;  %v299_v54 = vld [vmem:[#allocation7 + $0xe0] sm:$0xff] }
  0x96   : > { %1053 = vmatpush3.bf16.msra.mxu0 %v1052_v30  ;;  %v300_v55 = vld [vmem:[#allocation7 + $0xe8] sm:$0xff]  ;;  %v313_v56 = vld [vmem:[#allocation7 + $0x150] sm:$0xff]  ;;  %v314_v57 = vld [vmem:[#allocation7 + $0x158] sm:$0xff]  ;;  %v1064_v58 = vpack.c.bf16 %v282_v52, %v281_v51 }
  0x97   : > { %1055 = vmatprep.subr.bf16.mxu0 %v1054_v31  ;;  %v1066_v59 = vpack.c.bf16 %v300_v55, %v299_v54  ;;  %v283_v60 = vld [vmem:[#allocation7 + $0x60] sm:$0xff]  ;;  %v284_v61 = vld [vmem:[#allocation7 + $0x68] sm:$0xff]  ;;  %v1090_v62 = vpack.c.bf16 %v314_v57, %v313_v56  ;;  %v301_v63 = vld [vmem:[#allocation7 + $0xf0] sm:$0xff] }
  0x98   : > { %1082 = vmatpush3.bf16.msra.mxu1 %v1081_v34  ;;  %v302_v0 = vld [vmem:[#allocation7 + $0xf8] sm:$0xff]  ;;  %v315_v1 = vld [vmem:[#allocation7 + $0x160] sm:$0xff]  ;;  %v316_v2 = vld [vmem:[#allocation7 + $0x168] sm:$0xff]  ;;  %v1068_v4 = vpack.c.bf16 %v284_v61, %v283_v60 }
  0x99   : > { %1083 = vmatprep.subr.bf16.mxu1 %v1459_v8  ;;  %v1070_v5 = vpack.c.bf16 %v302_v0, %v301_v63  ;;  %v285_v6 = vld [vmem:[#allocation7 + $0x70] sm:$0xff]  ;;  %v286_v7 = vld [vmem:[#allocation7 + $0x78] sm:$0xff]  ;;  %v1093_v10 = vpack.c.bf16 %v316_v2, %v315_v1  ;;  %v527_v28 = vld [vmem:[#allocation9 + $0x100] sm:$0xff] }
  0x9a   : > { %1057 = vmatpush3.bf16.msra.mxu0 %v1056_v39  ;;  %v317_v11 = vld [vmem:[#allocation7 + $0x170] sm:$0xff]  ;;  %v318_v12 = vld [vmem:[#allocation7 + $0x178] sm:$0xff]  ;;  %v1072_v13 = vpack.c.bf16 %v286_v7, %v285_v6  ;;  %v528_v29 = vld [vmem:[#allocation9 + $0x108] sm:$0xff] }
  0x9b   : > { %1059 = vmatprep.subr.bf16.mxu0 %v1058_v40  ;;  %v1096_v14 = vpack.c.bf16 %v318_v12, %v317_v11  ;;  %v1727_v19 = vld [vmem:[%s1816_s3] sm:$0xff]  ;;  %v1131_v30 = vpack.c.bf16 %v528_v29, %v527_v28  ;;  %v530_v32 = vld [vmem:[#allocation9 + $0x118] sm:$0xff]  ;;  %v511_v34 = vld [vmem:[#allocation9 + $0x80] sm:$0xff] }
  0x9c   : > { %1085 = vmatpush3.bf16.msra.mxu1 %v1084_v43  ;;  %v270_v3 = vld [vmem:[#allocation2 + $0x1] sm:$0xff]  ;;  %v322_v21 = vrot.slane %v1727_v19, %v321_v18  ;;  %v512_v35 = vld [vmem:[#allocation9 + $0x88] sm:$0xff]  ;;  %v531_v36 = vld [vmem:[#allocation9 + $0x120] sm:$0xff] }
  0x9d   : > { %1086 = vmatprep.subr.bf16.mxu1 %v1459_v8  ;;  %387 = vmatprep.mubr.f32.mxu0 %v270_v3  ;;  %v269_v15 = vld [vmem:[#allocation2] sm:$0xff]  ;;  %v1098_v37 = vpack.c.bf16 %v512_v35, %v511_v34  ;;  %v532_v38 = vld [vmem:[#allocation9 + $0x128] sm:$0xff]  ;;  %v495_v39 = vld [vmem:[#allocation9] sm:$0xff] }
  0x9e   : > { %1061 = vmatpush3.bf16.msra.mxu0 %v1060_v49  ;;  %v529_v31 = vld [vmem:[#allocation9 + $0x110] sm:$0xff]  ;;  %v496_v40 = vld [vmem:[#allocation9 + $0x8] sm:$0xff]  ;;  %v1137_v41 = vpack.c.bf16 %v532_v38, %v531_v36  ;;  %v514_v44 = vld [vmem:[#allocation9 + $0x98] sm:$0xff] }
  0x9f   : > { %1063 = vmatprep.subr.bf16.mxu0 %v1062_v50  ;;  %v1134_v33 = vpack.c.bf16 %v530_v32, %v529_v31  ;;  %v1100_v42 = vpack.c.bf16 %v496_v40, %v495_v39  ;;  %v513_v43 = vld [vmem:[#allocation9 + $0x90] sm:$0xff]  ;;  %v534_v47 = vld [vmem:[#allocation9 + $0x138] sm:$0xff]  ;;  %v516_v54 = vld [vmem:[#allocation9 + $0xa8] sm:$0xff] }
  0xa0   : > { %1088 = vmatpush3.bf16.msra.mxu1 %v1087_v53  ;;  %v533_v45 = vld [vmem:[#allocation9 + $0x130] sm:$0xff]  ;;  %v1102_v46 = vpack.c.bf16 %v514_v44, %v513_v43  ;;  %v498_v50 = vld [vmem:[#allocation9 + $0x18] sm:$0xff]  ;;  %v515_v53 = vld [vmem:[#allocation9 + $0xa0] sm:$0xff] }
  0xa1   : > { %1089 = vmatprep.subr.bf16.mxu1 %v1459_v8  ;;  %v497_v49 = vld [vmem:[#allocation9 + $0x10] sm:$0xff]  ;;  %v1140_v51 = vpack.c.bf16 %v534_v47, %v533_v45  ;;  %v535_v55 = vld [vmem:[#allocation9 + $0x140] sm:$0xff]  ;;  %v1106_v56 = vpack.c.bf16 %v516_v54, %v515_v53  ;;  %v536_v57 = vld [vmem:[#allocation9 + $0x148] sm:$0xff]  ;;  %v478_v47 = vsub.s32 1, %v1721_v17 }
  0xa2   : > { %1065 = vmatpush3.bf16.msra.mxu0 %v1064_v58  ;;  %v1104_v52 = vpack.c.bf16 %v498_v50, %v497_v49  ;;  %v499_v58 = vld [vmem:[#allocation9 + $0x20] sm:$0xff]  ;;  %v1143_v60 = vpack.c.bf16 %v536_v57, %v535_v55  ;;  %v518_v63 = vld [vmem:[#allocation9 + $0xb8] sm:$0xff]  ;;  %v537_v0 = vld [vmem:[#allocation9 + $0x150] sm:$0xff]  ;;  %v483_v49 = vsub.s32 2, %v1721_v17  ;;  %v489_v55 = vsub.s32 3, %v1721_v17 }
  0xa3   : > { %1067 = vmatprep.subr.bf16.mxu0 %v1066_v59  ;;  %v500_v59 = vld [vmem:[#allocation9 + $0x28] sm:$0xff]  ;;  %v538_v2 = vld [vmem:[#allocation9 + $0x158] sm:$0xff]  ;;  %v501_v3 = vld [vmem:[#allocation9 + $0x30] sm:$0xff] }
  0xa4   : > { %1091 = vmatpush3.bf16.msra.mxu1 %v1090_v62  ;;  %v1108_v61 = vpack.c.bf16 %v500_v59, %v499_v58  ;;  %v517_v62 = vld [vmem:[#allocation9 + $0xb0] sm:$0xff]  ;;  %v519_v7 = vld [vmem:[#allocation9 + $0xc0] sm:$0xff]  ;;  %v526_v36 = vld [vmem:[#allocation9 + $0xf8] sm:$0xff]  ;;  %v484_v54 = vrot.slane %v1727_v19, %v483_v49  ;;  %v490_v58 = vrot.slane %v1727_v19, %v489_v55 }
  0xa5   : > { %1092 = vmatprep.subr.bf16.mxu1 %v1459_v8  ;;  %v1110_v1 = vpack.c.bf16 %v518_v63, %v517_v62  ;;  %v539_v11 = vld [vmem:[#allocation9 + $0x160] sm:$0xff]  ;;  %v525_v35 = vld [vmem:[#allocation9 + $0xf0] sm:$0xff]  ;;  %v510_v39 = vld [vmem:[#allocation9 + $0x78] sm:$0xff] }
  0xa6   : > { %1069 = vmatpush3.bf16.msra.mxu0 %v1068_v4  ;;  %v502_v4 = vld [vmem:[#allocation9 + $0x38] sm:$0xff]  ;;  %v523_v29 = vld [vmem:[#allocation9 + $0xe0] sm:$0xff]  ;;  %v1126_v38 = vpack.c.bf16 %v526_v36, %v525_v35 }
  0xa7   : > { %1071 = vmatprep.subr.bf16.mxu0 %v1070_v5  ;;  %v1146_v5 = vpack.c.bf16 %v538_v2, %v537_v0  ;;  %v1112_v6 = vpack.c.bf16 %v502_v4, %v501_v3  ;;  %v507_v32 = vld [vmem:[#allocation9 + $0x60] sm:$0xff]  ;;  %v545_v0 = vsub.s32 4, %v1721_v17 }
  0xa8   : > { %1094 = vmatpush3.bf16.msra.mxu1 %v1093_v10  ;;  %v520_v10 = vld [vmem:[#allocation9 + $0xc8] sm:$0xff] }
  0xa9   : > { %1095 = vmatprep.subr.bf16.mxu1 %v1459_v8  ;;  %v1114_v12 = vpack.c.bf16 %v520_v10, %v519_v7  ;;  %v546_v2 = vrot.slane %v1727_v19, %v545_v0 }
  0xaa   : > { %1073 = vmatpush3.bf16.msra.mxu0 %v1072_v13  ;;  %v540_v13 = vld [vmem:[#allocation9 + $0x168] sm:$0xff] }
  0xab   : > { %1099 = vmatprep.subr.bf16.mxu0 %v1098_v37  ;;  %v1149_v16 = vpack.c.bf16 %v540_v13, %v539_v11  ;;  %v509_v37 = vld [vmem:[#allocation9 + $0x70] sm:$0xff] }
  0xac   : > { %1097 = vmatpush3.bf16.msra.mxu1 %v1096_v14  ;;  %v503_v14 = vld [vmem:[#allocation9 + $0x40] sm:$0xff]  ;;  %v1128_v40 = vpack.c.bf16 %v510_v39, %v509_v37 }
  0xad   : > { %388 = vmatmul.mubr.f32.vlgmr.msra.gmra.mrb[0].mxu0 %v269_v15  ;;  %1130 = vmatprep.subr.bf16.mxu1 %v1459_v8  ;;  %v504_v15 = vld [vmem:[#allocation9 + $0x48] sm:$0xff] }
  0xae   : > { %1101 = vmatpush3.bf16.msra.mxu0 %v1100_v42  ;;  %v1116_v18 = vpack.c.bf16 %v504_v15, %v503_v14 }
  0xaf   : > { %1005 = vmatmul.mubr.f32.vlgmr.msra.gmra.mrb[0].mxu1 %v1710_v48  ;;  %1103 = vmatprep.subr.bf16.mxu0 %v1102_v46 }
  0xb0   : > { %1039 = vmatprep.mubr.msk.f32.mxu1 %vm1460_vm0, %v1461_v9  ;;  %1132 = vmatpush3.bf16.msra.mxu1 %v1131_v30  ;;  %v524_v30 = vld [vmem:[#allocation9 + $0xe8] sm:$0xff] }
  0xb1   : > { %1133 = vmatprep.subr.bf16.mxu1 %v1459_v8  ;;  %v1122_v31 = vpack.c.bf16 %v524_v30, %v523_v29 }
  0xb2   : > { %1105 = vmatpush3.bf16.msra.mxu0 %v1104_v52 }
  0xb3   : > { %1107 = vmatprep.subr.bf16.mxu0 %v1106_v56 }
  0xb4   : > { %1135 = vmatpush3.bf16.msra.mxu1 %v1134_v33  ;;  %v508_v33 = vld [vmem:[#allocation9 + $0x68] sm:$0xff] }
  0xb5   : > { %1136 = vmatprep.subr.bf16.mxu1 %v1459_v8  ;;  %v1124_v34 = vpack.c.bf16 %v508_v33, %v507_v32  ;;  %v723_v33 = vld [vmem:[#allocation2 + $0x8] sm:$0x3] (!%p862_p5) }
  0xb6   : > { %1109 = vmatpush3.bf16.msra.mxu0 %v1108_v61  ;;  %724 = vst [vmem:[#allocation2] sm:$0x3] (!%p862_p5), %v723_v33 }
  0xb7   : > { %1111 = vmatprep.subr.bf16.mxu0 %v1110_v1 }
  0xb8   : > { %1138 = vmatpush3.bf16.msra.mxu1 %v1137_v41 }
  0xb9   : > { %1139 = vmatprep.subr.bf16.mxu1 %v1459_v8 }
  0xba   : > { %1113 = vmatpush3.bf16.msra.mxu0 %v1112_v6 }
  0xbb   : > { %1115 = vmatprep.subr.bf16.mxu0 %v1114_v12 }
  0xbc   : > { %1141 = vmatpush3.bf16.msra.mxu1 %v1140_v51  ;;  %v479_v51 = vrot.slane %v1727_v19, %v478_v47 }
  0xbd   : > { %1142 = vmatprep.subr.bf16.mxu1 %v1459_v8 }
  0xbe   : > { %1117 = vmatpush3.bf16.msra.mxu0 %v1116_v18  ;;  %v702_v18 = vsub.s32 5, %v1721_v17 }
  0xc0   : > { %1144 = vmatpush3.bf16.msra.mxu1 %v1143_v60 }
  0xc1   : > { %1145 = vmatprep.subr.bf16.mxu1 %v1459_v8 }
  0xc4   : > { %1147 = vmatpush3.bf16.msra.mxu1 %v1146_v5 }
  0xc5   : > { %1148 = vmatprep.subr.bf16.mxu1 %v1459_v8 }
  0xc8   : > { %1150 = vmatpush3.bf16.msra.mxu1 %v1149_v16 }
  0xc9   : > { %1151 = vmatprep.subr.bf16.mxu1 %v1459_v8 }
 0x180   : > { %v900_v20 = vpop.f32.mrb[0].mxu0 }
 0x181   : > { %v901_v22 = vpop.f32.mrb[1].mxu0 }
 0x182   : > { %v902_v23 = vadd.f32 %v901_v22, %v900_v20  ;;  %v459_v24 = vpop.f32.mrb[0].mxu1  ;;  %v521_v20 = vld [vmem:[#allocation9 + $0xd0] sm:$0xff] }
 0x183   : > { %v1006_v25 = vpop.f32.mrb[1].mxu1  ;;  %v541_v22 = vld [vmem:[#allocation9 + $0x170] sm:$0xff] }
 0x184   : > { %v390_v26 = vadd.f32 %v902_v23, %v322_v21  ;;  %v522_v21 = vld [vmem:[#allocation9 + $0xd8] sm:$0xff]  ;;  %v505_v25 = vld [vmem:[#allocation9 + $0x50] sm:$0xff] }
 0x185   : > { %v1118_v23 = vpack.c.bf16 %v522_v21, %v521_v20  ;;  %v707_v20 = vsub.s32 6, %v1721_v17 }
 0x186   : > { %v1730_v27 = vadd.f32 %v459_v24, %v390_v26  ;;  %v542_v24 = vld [vmem:[#allocation9 + $0x178] sm:$0xff] }
 0x187   : > { %v506_v26 = vld [vmem:[#allocation9 + $0x58] sm:$0xff]  ;;  %1119 = vmatprep.subr.bf16.mxu0 %v1118_v23 }
 0x188   : > { %463 = vadd.xlane.f32.xlu0 %v1730_v27  ;;  %v466_v9 = vmul.f32 %v1730_v27, %v1730_v27  ;;  %v1120_v28 = vpack.c.bf16 %v506_v26, %v505_v25  ;;  %v713_v25 = vsub.s32 7, %v1721_v17 }
 0x18a   : > { %1121 = vmatpush3.bf16.msra.mxu0 %v1120_v28  ;;  %v714_v28 = vrot.slane %v1727_v19, %v713_v25 }
 0x18b   : > { %1123 = vmatprep.subr.bf16.mxu0 %v1122_v31 }
 0x18c   : > { %467 = vadd.xlane.f32.xlu0 %v466_v9  ;;  %v1152_v9 = vpack.c.bf16 %v542_v24, %v541_v22  ;;  %v703_v22 = vrot.slane %v1727_v19, %v702_v18  ;;  %v708_v24 = vrot.slane %v1727_v19, %v707_v20 }
 0x18e   : > { %1153 = vmatpush3.bf16.msra.mxu1 %v1152_v9  ;;  %1125 = vmatpush3.bf16.msra.mxu0 %v1124_v34 }
 0x18f   : > { %1127 = vmatprep.subr.bf16.mxu0 %v1126_v38 }
 0x192   : > { %1129 = vmatpush3.bf16.msra.mxu0 %v1128_v40 }
 0x215   : > { %v464_v8 = vpop.xlane.xlu0 %463 }
 0x216   : > { %v465_v41 = vmul.f32 0.125, %v464_v8 }
 0x218   : > { %v470_v43 = vmul.f32 %v465_v41, %v465_v41  ;;  %v472_v50 = vsub.f32 %v1730_v27, %v465_v41 }
 0x219   : > { %v468_v42 = vpop.xlane.xlu0 %467 }
 0x21a   : > { %v469_v44 = vmul.f32 0.125, %v468_v42 }
 0x21c   : > { %v471_v45 = vsub.f32 %v469_v44, %v470_v43 }
 0x21e   : > { %v473_v46 = vadd.f32 1e-08, %v471_v45 }
 0x220   : > { %1259 = vrsqrt.f32 %v473_v46 }
 0x22a   : > { %v1260_v52 = vpop.eup %1259 }
 0x22b   : > { %v475_v53 = vmul.f32 %v1260_v52, %v472_v50 }
 0x22d   : > { %v480_v56 = vmul.f32 %v479_v51, %v475_v53 }
 0x22f   : > { %v485_v57 = vadd.f32 %v484_v54, %v480_v56 }
 0x231   : > { %v486_v59 = vmax.f32 %v485_v57, 0.0 }
 0x233   : > { %v491_v60 = vmul.f32 %v490_v58, %v486_v59 }
 0x235   : > { %492 = vst [vmem:[#allocation3 + $0x4] sm:$0xff] %v491_v60  ;;  %1040 = vmatmul.mubr.f32.vlgmr.msra.gmra.mrb[2].mxu1 %v491_v60 }
 0x23c   : > { %v494_v61 = vld [vmem:[#allocation3 + $0x2] sm:$0xff] }
 0x23d   : > { %v493_v62 = vld [vmem:[#allocation3] sm:$0xff]  ;;  %611 = vmatprep.mubr.f32.mxu0 %v494_v61  ;;  %v725_v34 = vld [vmem:[#allocation3 + $0x8] sm:$0xf] (!%p862_p5) }
 0x23e   : > { %612 = vmatmul.mubr.f32.vlgmr.msra.gmra.mrb[2].mxu0 %v493_v62  ;;  %726 = vst [vmem:[#allocation3] sm:$0xf] (!%p862_p5), %v725_v34 }
 0x308   : > { %v683_v27 = vpop.f32.mrb[2].mxu1 }
 0x309   : > { %v1041_v63 = vpop.f32.mrb[3].mxu1 }
 0x311   : > { %v952_v1 = vpop.f32.mrb[2].mxu0 }
 0x312   : > { %v953_v3 = vpop.f32.mrb[3].mxu0 }
 0x313   : > { %v954_v4 = vadd.f32 %v953_v3, %v952_v1 }
 0x315   : > { %v614_v5 = vadd.f32 %v954_v4, %v546_v2 }
 0x317   : > { %v684_v6 = vadd.f32 %v683_v27, %v614_v5 }
 0x319   : > { %687 = vadd.xlane.f32.xlu1 %v684_v6  ;;  %v690_v7 = vmul.f32 %v684_v6, %v684_v6 }
 0x31d   : > { %691 = vadd.xlane.f32.xlu1 %v690_v7 }
 0x3a6   : > { %v688_v10 = vpop.xlane.xlu1 %687 }
 0x3a7   : > { %v689_v11 = vmul.f32 0.125, %v688_v10 }
 0x3a9   : > { %v694_v13 = vmul.f32 %v689_v11, %v689_v11  ;;  %v696_v21 = vsub.f32 %v684_v6, %v689_v11 }
 0x3aa   : > { %v692_v12 = vpop.xlane.xlu1 %691 }
 0x3ab   : > { %v693_v14 = vmul.f32 0.125, %v692_v12 }
 0x3ad   : > { %v695_v15 = vsub.f32 %v693_v14, %v694_v13 }
 0x3af   : > { %v697_v16 = vadd.f32 1e-08, %v695_v15 }
 0x3b1   : > { %1261 = vrsqrt.f32 %v697_v16 }
 0x3bb   : > { %v1262_v23 = vpop.eup %1261 }
 0x3bc   : > { %v699_v26 = vmul.f32 %v1262_v23, %v696_v21 }
 0x3be   : > { %v704_v9 = vmul.f32 %v703_v22, %v699_v26 }
 0x3c0   : > { %v709_v29 = vadd.f32 %v708_v24, %v704_v9 }
 0x3c2   : > { %v710_v30 = vmax.f32 %v709_v29, 0.0  ;;  %722 = sbr.rel (%p862_p5) target bundleno = 969 (0x3c9), region = 56 }
 0x3c4   : > { %v715_v31 = vmul.f32 %v714_v28, %v710_v30 }
 0x3c6   : > { %v716_v32 = vadd.f32 %v715_v31, %v1710_v48 }
 0x3c8   : > { %717 = vst [vmem:[%s1700_s1] sm:$0xff] %v716_v32 }
 0x3c9 PF: > { %s864_s28 = sshll.u32 %s1439_s19, 1  ;;  %s743_s12 = sshll.u32 %s1700_s1, 4  ;;  %s1763_s12 = int_to_ptr.vmem [resolvable:$true] %s743_s12 }
 0x3ca   : > { %s739_s11 = sadd.s32 %s1435_s18, %s864_s28  ;;  %s728_s30 = scalar_lea.sflag [#allocation6], %s1686_s9 }
 0x3cb   : > { %s865_s29 = sshll.u32 %s739_s11, 7  ;;  %s1349_s23 = scalar_lea.vmem %s1763_s12, 128 }
 0x3cc   : > { %s741_s6 = scalar_lea.hbm %s1817_s4, %s865_s29  ;;  %p1350_p7 = scmp.ne.s32.totalorder %s1763_s12, %s1349_s23 }
 0x3cd   : > { %s1462_s8 = smov [#allocation10]  }
 0x3ce   : > { %p1351_p12 = pnand %p1350_p7, %p1624_p9  ;;  %s1353_s19 = sshll.u32 %s1462_s8, 4  ;;  %s1354_s19 = int_to_ptr.vmem [resolvable:$false] %s1353_s19 }
 0x3cf   : > { %s1355_s18 = scalar_lea.vmem %s1354_s19, 256  ;;  %p1356_p2 = scmp.lt.s32.totalorder %s1763_s12, %s1354_s19 }
 0x3d0   : > { %p1352_p13 = pneg %p1351_p12  ;;  %p1357_p6 = scmp.lt.s32.totalorder %s1355_s18, %s1349_s23 }
 0x3d2   : > { %p1358_p11 = por %p1357_p6, %p1356_p2 }
 0x3d4   : > { %p1359_p10 = pnand %p1358_p11, %p1352_p13 }
 0x3d6   : > { %1362 = shalt.err (!%p1359_p10)
}
 0x3d7   : > { %s1363_s13 = scalar_lea.hbm %s741_s6, 128  ;;  %s1367_s10 = scalar_lea.hbm %s1817_s4, 512 }
 0x3d8   : > { %p1364_p1 = scmp.ne.s32.totalorder %s741_s6, %s1363_s13  ;;  %p1368_p0 = scmp.lt.u32.totalorder %s741_s6, %s1817_s4 }
 0x3d9   : > { %p1369_p3 = scmp.lt.u32.totalorder %s1367_s10, %s1363_s13  ;;  %p1371_p7 = scmp.lt.u32.totalorder %s1363_s13, %s741_s6 }
 0x3da   : > { %p1365_p8 = pnand %p1364_p1, %p1624_p9 }
 0x3db   : > { %p1370_p5 = por %p1369_p3, %p1368_p0 }
 0x3dc   : > { %p1366_p4 = pneg %p1365_p8 }
 0x3dd   : > { %p1372_p12 = por %p1371_p7, %p1370_p5 }
 0x3df   : > { %p1373_p13 = pnand %p1372_p12, %p1366_p4 }
 0x3e1   : > { %1376 = shalt.err (!%p1373_p13)
}
 0x3e2   : > { %1164 = dma.vmem_to_hbm [thread:$0]  (%p1624_p9), %s1763_s12, 128, %s741_s6, %s728_s30  }
 0x3e3 PF: > { %s1845_s25 = sld [smem:[#allocation14_spill]]  ;;  %s1846_s26 = sld [smem:[#allocation15_spill]] }
 0x3e4   : > { %p1186_p2 = scmp.ge.s32.totalorder %s1451_s22, 2 }
 0x3e9   : > { %s755_s28 = sand.u32 1, %s1845_s25   ;;  %p1847_p6 = scmp.ne.s32.totalorder %s1846_s26, 0 }
 0x3ea   : > { %s756_s11 = scalar_lea.sflag [#allocation6], %s755_s28 }
 0x3eb   : > { %p1178_p11 = pnand %p1186_p2, %p1847_p6 }
 0x3ed   : > { %1418 = dma.done.wait (!%p1178_p11), %s756_s11, 128  }
 0x3ee   : > { %1420 = vsyncadd (!%p1178_p11), %s756_s11, 4294967168  ;;  %s21_s22 = sadd.s32 1, %s1451_s22   ;;  %s1848_s7 = sld [smem:[#allocation16_spill]] }
 0x3ef   : > { %p18_p10 = scmp.ge.s32.totalorder %s21_s22, 6   ;;  %s1849_s15 = smov %s1427_s16 }
 0x3f0   : > { %s1850_s16 = smov %s1431_s17  ;;  %s1851_s17 = smov %s1641_s2 }
 0x3f1   : > { %s1852_s18 = smov %s1443_s20  ;;  %s1853_s19 = smov %s1447_s21 }
 0x3f2   : > { %s1855_s21 = smov %s1861_s5  ;;  %20 = sbr.rel (!%p18_p10) target bundleno = 11 (0xb), region = 97 }
 0x3f4   : > { %s1854_s20 = smov %s1848_s7 }
 0x3f9   :  { %761 = vsyncpa [#allocation5], 1 }
 0x3fa   :  { %763 = vsyncpa [#allocation5 + $0x1], 1 }
 0x3fb   :  { %764 = vsyncpa [#allocation8], 1 }
 0x3fc   :  { %765 = vsyncpa [#allocation6], 1 }
 0x3fd   :  { %767 = vsyncpa [#allocation6 + $0x1], 1 }

</bundles_post_ra>
